<compile_context>
chip_gen: v5e
topology: v5e:2x2
jax: 0.10.0
libtpu: 0.0.40
codegen_flags: <defaults>
</compile_context>

<pallas_src>
import functools

import jax
import jax.numpy as jnp
from jax import lax
from jax.experimental import pallas as pl
from jax.experimental.pallas import tpu as pltpu

_BN_EPS = 1e-5
_LANE = 128
_SUBLANE = 8
_ROW_ALIGN = 16  # bf16 hidden scratch: 16 rows per packed sublane tile


def _round_up(v, m):
    return (v + m - 1) // m * m


def _mlp_fused_kernel(x_ref, w1_ref, b1_ref, g_ref, beta_ref, w2_ref, b2_ref,
                      o_ref, h_ref, stats_ref, *, n_valid):
    """Fused  (x @ W1 + b1) -> BatchNorm1d(train) -> ReLU -> (@ W2 + b2).

    grid = (2, n_tiles):
      phase 0          : per batch tile, first matmul into the resident bf16
                         VMEM hidden buffer + streamed masked sum / sum_sq
                         accumulation into stats_ref (rows 0 / 1)
      phase 1, tile 0  : finalize mean / rstd in place (stats_ref rows 0 / 1)
      phase 1          : per batch tile, normalize + affine + ReLU + second
                         matmul -> output
    """
    phase = pl.program_id(0)
    tile = pl.program_id(1)
    tm = x_ref.shape[0]
    row0 = pl.multiple_of(tile * tm, tm)

    @pl.when(jnp.logical_and(phase == 0, tile == 0))
    def _init_stats():
        stats_ref[...] = jnp.zeros_like(stats_ref)

    @pl.when(phase == 0)
    def _first_linear_and_partial_stats():
        # bf16 MXU inputs, f32 accumulation; bias add in f32 on the VPU.
        z = jnp.dot(x_ref[...], w1_ref[...],
                    preferred_element_type=jnp.float32) + b1_ref[...]
        # Streaming BatchNorm statistics: masked per-tile sum / sum-of-squares,
        # accumulated while the MXU is busy (VPU/XLU slots, effectively free).
        # Zero-padded batch rows are masked out; padded feature columns are
        # all-zero and therefore harmless.
        row_ids = row0 + lax.broadcasted_iota(jnp.int32, (tm, 1), 0)
        zm = z * (row_ids < n_valid).astype(jnp.float32)
        partial = jnp.concatenate(
            [jnp.sum(zm, axis=0, keepdims=True),        # sum
             jnp.sum(zm * z, axis=0, keepdims=True)],   # sum of squares
            axis=0)
        stats_ref[...] += partial
        # Hidden activations stay resident in VMEM as bf16 (they are consumed
        # as bf16 by the second matmul) — halves the dominant scratch buffer.
        h_ref[pl.ds(row0, tm), :] = z.astype(h_ref.dtype)

    @pl.when(jnp.logical_and(phase == 1, tile == 0))
    def _finalize_stats():
        inv_n = jnp.float32(1.0 / n_valid)
        mean = stats_ref[0:1, :] * inv_n
        var = jnp.maximum(stats_ref[1:2, :] * inv_n - mean * mean, 0.0)
        rstd = lax.rsqrt(var + _BN_EPS)
        stats_ref[...] = jnp.concatenate([mean, rstd], axis=0)

    @pl.when(phase == 1)
    def _norm_relu_second_linear():
        mean = stats_ref[0:1, :]
        rstd = stats_ref[1:2, :]
        z = h_ref[pl.ds(row0, tm), :].astype(jnp.float32)
        z_hat = (z - mean) * rstd
        y = jnp.maximum(z_hat * g_ref[...] + beta_ref[...], 0.0)
        out = jnp.dot(y.astype(jnp.bfloat16), w2_ref[...],
                      preferred_element_type=jnp.float32) + b2_ref[...]
        # Output kept f32 to match the PyTorch module's dtype; flip to bf16 if
        # the consumer tolerates it (halves output writeback).
        o_ref[...] = out.astype(o_ref.dtype)


def init_mlp_params(key, dimension):
    """Parameter init matching nn.Linear / nn.BatchNorm1d defaults.

    Linear: weight, bias ~ U(-1/sqrt(fan_in), 1/sqrt(fan_in)).
    BatchNorm1d: gamma = 1, beta = 0.
    Weights are stored transposed: (D_in, D_out), unpadded f32.
    """
    num_layers = len(dimension) - 1
    params = []
    for i in range(num_layers):
        d_in, d_out = dimension[i], dimension[i + 1]
        key, kw, kb = jax.random.split(key, 3)
        bound = 1.0 / jnp.sqrt(jnp.float32(d_in))
        w = jax.random.uniform(kw, (d_in, d_out), jnp.float32, -bound, bound)
        b = jax.random.uniform(kb, (1, d_out), jnp.float32, -bound, bound)
        layer = {"w": w, "b": b}
        if i < num_layers - 1:
            layer["gamma"] = jnp.ones((1, d_out), jnp.float32)
            layer["beta"] = jnp.zeros((1, d_out), jnp.float32)
        params.append(layer)
    return params


def pack_mlp_params(params):
    """One-time packing: pad feature dims to multiples of 128 (lane-dense) and
    cast matmul weights to bf16 (halves the weight DMA bytes)."""
    assert len(params) == 2, "fused kernel supports the 2-linear-layer MLP"
    l0, l1 = params
    d0, d1 = l0["w"].shape
    _, d2 = l1["w"].shape
    d0p, d1p, d2p = (_round_up(d, _LANE) for d in (d0, d1, d2))

    def pad2(a, r, c):
        return jnp.pad(a, ((0, r - a.shape[0]), (0, c - a.shape[1])))

    return {
        "w1": pad2(l0["w"], d0p, d1p).astype(jnp.bfloat16),
        "b1": pad2(l0["b"], 1, d1p),
        "gamma": pad2(l0["gamma"], 1, d1p),
        "beta": pad2(l0["beta"], 1, d1p),
        "w2": pad2(l1["w"], d1p, d2p).astype(jnp.bfloat16),
        "b2": pad2(l1["b"], 1, d2p),
    }


def _pick_vmem_limit(n_pad, tm, d0p, d1p, d2p):
    """Rough per-kernel VMEM estimate -> explicit vmem_limit_bytes."""
    est = (n_pad * d1p * 2                           # resident bf16 hidden acts
           + 2 * 2 * (d0p * d1p + d1p * d2p)         # bf16 W1/W2 x2 pipeline bufs
           + 2 * 4 * _SUBLANE * (3 * d1p + d2p)      # b1/gamma/beta/b2 (8-row pad)
           + 2 * 2 * tm * d0p                        # bf16 x tiles, double buffered
           + 2 * 4 * tm * d2p                        # f32 out tiles, double buffered
           + 4 * _SUBLANE * d1p)                     # stats scratch
    # TODO(synk): when `est` exceeds ~48 MiB (v7x: 64 MiB physical VMEM), switch
    # to a recompute variant that drops the resident hidden buffer (phase 0
    # streams only sum/sum_sq, phase 1 recomputes x @ W1 + b1 per tile).
    return int(min(max(2 * est, 32 << 20), 48 << 20))


def mlp_forward(packed, x, dimension, tm=256):
    """Fused Pallas forward of MultiLayerPerceptron (training mode, defaults)."""
    # TODO(synk): generalize the fused kernel to depth > 2 / bias=False /
    # use_norm=False configurations of the module (this covers the default
    # Linear -> BatchNorm1d -> ReLU -> Linear case).
    assert len(dimension) == 3, "fused kernel implemented for dimension=[D0,D1,D2]"
    d0, d1, d2 = dimension
    n = x.shape[0]
    if n == 0:
        # Mirrors the eval-mode empty-batch short circuit of the PyTorch module.
        return jnp.zeros((0, d2), x.dtype)

    d0p, d1p, d2p = (_round_up(d, _LANE) for d in (d0, d1, d2))
    # tm multiple of 16 (bf16 hidden sublane packing); default 256 feeds the
    # 256x256 MXUs on v6e/v7x (128 is already native on v5e).
    tm = max(_ROW_ALIGN,
             _round_up(min(tm, _round_up(n, _ROW_ALIGN)), _ROW_ALIGN))
    n_pad = _round_up(n, tm)
    n_tiles = n_pad // tm
    last_tile = n_tiles - 1

    # Pad batch (rows) and input features (lanes) with zeros and cast x to bf16
    # once in the wrapper (half the x DMA bytes / double-buffer VMEM).  Padded
    # rows are masked out of the BN statistics and sliced off the output.
    x_p = jnp.pad(x.astype(jnp.bfloat16), ((0, n_pad - n), (0, d0p - d0)))

    kernel = functools.partial(_mlp_fused_kernel, n_valid=n)

    # TODO(synk): mark the constant-index resident operands (W1/W2/b1/gamma/
    # beta/b2) with pipeline_mode=pl.Buffered(1) to drop their second pipeline
    # buffer once validated on the target JAX build (matters for large dims).
    out_p = pl.pallas_call(
        kernel,
        out_shape=jax.ShapeDtypeStruct((n_pad, d2p), jnp.float32),
        grid_spec=pltpu.PrefetchScalarGridSpec(
            num_scalar_prefetch=0,
            grid=(2, n_tiles),
            in_specs=[
                # x: streamed in phase 0; parked at its last block in phase 1
                # (constant index => no redundant re-fetch).
                pl.BlockSpec((tm, d0p),
                             lambda p, t: ((1 - p) * t + p * last_tile, 0)),
                pl.BlockSpec((d0p, d1p), lambda p, t: (0, 0)),   # W1 (resident)
                pl.BlockSpec((1, d1p), lambda p, t: (0, 0)),     # b1
                pl.BlockSpec((1, d1p), lambda p, t: (0, 0)),     # gamma
                pl.BlockSpec((1, d1p), lambda p, t: (0, 0)),     # beta
                pl.BlockSpec((d1p, d2p), lambda p, t: (0, 0)),   # W2 (resident)
                pl.BlockSpec((1, d2p), lambda p, t: (0, 0)),     # b2
            ],
            # Output is only written in phase 1; its block index is frozen at 0
            # during phase 0 so no stale writeback happens.
            out_specs=pl.BlockSpec((tm, d2p), lambda p, t: (p * t, 0)),
            scratch_shapes=[
                pltpu.VMEM((n_pad, d1p), jnp.bfloat16),  # resident hidden acts
                pltpu.VMEM((2, d1p), jnp.float32),       # row0: sum->mean, row1: sumsq->rstd
            ],
        ),
        compiler_params=pltpu.CompilerParams(
            # Cross-tile BatchNorm statistics dependency => both axes arbitrary.
            # TODO(synk): on v7x, split the batch tiles across the 2 TensorCores
            # with a per-core partial-stats exchange (CMEM + core_barrier) to
            # use both cores.
            dimension_semantics=("arbitrary", "arbitrary"),
            vmem_limit_bytes=_pick_vmem_limit(n_pad, tm, d0p, d1p, d2p)),
    )(x_p, packed["w1"], packed["b1"], packed["gamma"], packed["beta"],
      packed["w2"], packed["b2"])

    return out_p[:n, :d2]


def _reference_forward(params, x):
    """Pure-JAX reference mirroring the kernel's deliberate perf choices
    (bf16 MXU inputs, bf16-resident hidden activations); BN statistics and all
    normalization / bias / ReLU math are f32, as in the kernel."""
    l0, l1 = params
    z = jnp.dot(x.astype(jnp.bfloat16), l0["w"].astype(jnp.bfloat16),
                preferred_element_type=jnp.float32) + l0["b"]
    mean = jnp.mean(z, axis=0, keepdims=True)
    var = jnp.mean(z * z, axis=0, keepdims=True) - mean * mean
    h = z.astype(jnp.bfloat16).astype(jnp.float32)   # bf16-resident hidden
    z_hat = (h - mean) * lax.rsqrt(var + _BN_EPS)
    y = jnp.maximum(z_hat * l0["gamma"] + l0["beta"], 0.0)
    return jnp.dot(y.astype(jnp.bfloat16), l1["w"].astype(jnp.bfloat16),
                   preferred_element_type=jnp.float32) + l1["b"]


if __name__ == "__main__":
    dimension = (32, 64, 16)   # MLP([32, 64, 16]): Linear -> BN -> ReLU -> Linear
    batch = 20                 # 2 batch tiles of 16 rows; last tile only 4 valid

    key = jax.random.PRNGKey(0)
    key, kx = jax.random.split(key)
    x = jax.random.normal(kx, (batch, dimension[0]), jnp.float32)

    params = init_mlp_params(key, dimension)
    packed = pack_mlp_params(params)

    fwd = jax.jit(mlp_forward, static_argnames=("dimension", "tm"))
    out = jax.block_until_ready(fwd(packed, x, dimension=dimension, tm=16))

    ref = _reference_forward(params, x)
    assert out.shape == (batch, dimension[-1])
    assert jnp.allclose(out, ref, atol=3e-3, rtol=3e-3), (
        "mismatch vs reference: max|diff|="
        + str(float(jnp.max(jnp.abs(out - ref)))))

    print("KERNEL_OK")
</pallas_src>

<mosaic_0001>
module attributes {stable_mosaic.version = 11 : i64} {
  func.func @_mlp_fused_kernel(%arg0: i32, %arg1: i32, %arg2: memref<16x128xbf16, #tpu.memory_space<vmem>>, %arg3: memref<128x128xbf16, #tpu.memory_space<vmem>>, %arg4: memref<1x128xf32, #tpu.memory_space<vmem>>, %arg5: memref<1x128xf32, #tpu.memory_space<vmem>>, %arg6: memref<1x128xf32, #tpu.memory_space<vmem>>, %arg7: memref<128x128xbf16, #tpu.memory_space<vmem>>, %arg8: memref<1x128xf32, #tpu.memory_space<vmem>>, %arg9: memref<16x128xf32, #tpu.memory_space<vmem>>, %arg10: memref<32x128xbf16, #tpu.memory_space<vmem>>, %arg11: memref<2x128xf32, #tpu.memory_space<vmem>>) attributes {dimension_semantics = [#tpu.dimension_semantics<arbitrary>, #tpu.dimension_semantics<arbitrary>], iteration_bounds = array<i64: 2, 2>, scalar_prefetch = 0 : i64, scratch_operands = 2 : i64, tpu.core_type = #tpu.core_type<tc>, window_params = [{transform_indices = @transform_0, window_bounds = array<i64: 16, 128>}, {pipeline_mode = #tpu.pipeline_mode<synchronous>, transform_indices = @transform_1, window_bounds = array<i64: 128, 128>}, {pipeline_mode = #tpu.pipeline_mode<synchronous>, transform_indices = @transform_2, window_bounds = array<i64: 1, 128>}, {pipeline_mode = #tpu.pipeline_mode<synchronous>, transform_indices = @transform_3, window_bounds = array<i64: 1, 128>}, {pipeline_mode = #tpu.pipeline_mode<synchronous>, transform_indices = @transform_4, window_bounds = array<i64: 1, 128>}, {pipeline_mode = #tpu.pipeline_mode<synchronous>, transform_indices = @transform_5, window_bounds = array<i64: 128, 128>}, {pipeline_mode = #tpu.pipeline_mode<synchronous>, transform_indices = @transform_6, window_bounds = array<i64: 1, 128>}, {transform_indices = @transform_7, window_bounds = array<i64: 16, 128>}]} {
    %c16_i32 = arith.constant 16 : i32
    %0 = arith.muli %arg1, %c16_i32 : i32
    %1 = tpu.assume_multiple %0, 16 : i32
    %c0_i32 = arith.constant 0 : i32
    %2 = arith.cmpi eq, %arg0, %c0_i32 : i32
    %c0_i32_0 = arith.constant 0 : i32
    %3 = arith.cmpi eq, %arg1, %c0_i32_0 : i32
    %4 = arith.andi %2, %3 : i1
    %5 = arith.extui %4 : i1 to i32
    %c0_i32_1 = arith.constant 0 : i32
    %6 = arith.cmpi ne, %5, %c0_i32_1 : i32
    scf.if %6 {
      %cst = arith.constant 0.000000e+00 : f32
      %18 = vector.broadcast %cst : f32 to vector<2x128xf32>
      %c0 = arith.constant 0 : index
      %c0_8 = arith.constant 0 : index
      %19 = vector.load %arg11[%c0, %c0_8] : memref<2x128xf32, #tpu.memory_space<vmem>>, vector<2x128xf32>
      tpu.vector_store %arg11[%c0, %c0_8], %18 {strides = array<i32>} : memref<2x128xf32, #tpu.memory_space<vmem>>, vector<2x128xf32>,
    } else {
    }
    %c0_i32_2 = arith.constant 0 : i32
    %7 = arith.cmpi eq, %arg0, %c0_i32_2 : i32
    %8 = arith.extui %7 : i1 to i32
    %c0_i32_3 = arith.constant 0 : i32
    %9 = arith.cmpi ne, %8, %c0_i32_3 : i32
    scf.if %9 {
      %c0 = arith.constant 0 : index
      %c0_8 = arith.constant 0 : index
      %18 = vector.load %arg2[%c0, %c0_8] : memref<16x128xbf16, #tpu.memory_space<vmem>>, vector<16x128xbf16>
      %c0_9 = arith.constant 0 : index
      %c0_10 = arith.constant 0 : index
      %19 = vector.load %arg3[%c0_9, %c0_10] : memref<128x128xbf16, #tpu.memory_space<vmem>>, vector<128x128xbf16>
      %cst = arith.constant dense<0.000000e+00> : vector<16x128xf32>
      %20 = tpu.matmul %18, %19, %cst {dimension_numbers = #tpu.dot_dimension_numbers<[1], [0], [0], [1], [0, 0, 1, 1], [], []>} : vector<16x128xbf16>, vector<128x128xbf16>, vector<16x128xf32> -> vector<16x128xf32>
      %c0_11 = arith.constant 0 : index
      %c0_12 = arith.constant 0 : index
      %21 = vector.load %arg4[%c0_11, %c0_12] : memref<1x128xf32, #tpu.memory_space<vmem>>, vector<1x128xf32>
      %22 = vector.broadcast %21 : vector<1x128xf32> to vector<16x128xf32>
      %23 = arith.addf %20, %22 : vector<16x128xf32>
      %24 = tpu.iota {dimensions = array<i32: 0>} : vector<16x1xi32>
      %25 = vector.broadcast %1 : i32 to vector<16x1xi32>
      %26 = arith.addi %25, %24 : vector<16x1xi32>
      %c20_i32 = arith.constant 20 : i32
      %27 = vector.broadcast %c20_i32 : i32 to vector<16x1xi32>
      %28 = arith.cmpi slt, %26, %27 : vector<16x1xi32>
      %29 = arith.extui %28 : vector<16x1xi1> to vector<16x1xi32>
      %30 = arith.sitofp %29 : vector<16x1xi32> to vector<16x1xf32>
      %31 = vector.broadcast %30 : vector<16x1xf32> to vector<16x128xf32>
      %32 = arith.mulf %23, %31 : vector<16x128xf32>
      %cst_13 = arith.constant dense<0.000000e+00> : vector<128xf32>
      %33 = vector.multi_reduction <add>, %32, %cst_13 [0] : vector<16x128xf32> to vector<128xf32>
      %34 = vector.shape_cast %33 : vector<128xf32> to vector<1x128xf32>
      %35 = arith.mulf %32, %23 : vector<16x128xf32>
      %cst_14 = arith.constant dense<0.000000e+00> : vector<128xf32>
      %36 = vector.multi_reduction <add>, %35, %cst_14 [0] : vector<16x128xf32> to vector<128xf32>
      %37 = vector.shape_cast %36 : vector<128xf32> to vector<1x128xf32>
      %38 = tpu.concatenate %34, %37 in 0 : vector<1x128xf32>, vector<1x128xf32> -> vector<2x128xf32>
      %c0_15 = arith.constant 0 : index
      %c0_16 = arith.constant 0 : index
      %39 = vector.load %arg11[%c0_15, %c0_16] : memref<2x128xf32, #tpu.memory_space<vmem>>, vector<2x128xf32>
      %40 = arith.addf %39, %38 : vector<2x128xf32>
      %c0_17 = arith.constant 0 : index
      %c0_18 = arith.constant 0 : index
      %41 = vector.load %arg11[%c0_17, %c0_18] : memref<2x128xf32, #tpu.memory_space<vmem>>, vector<2x128xf32>
      tpu.vector_store %arg11[%c0_17, %c0_18], %40 {strides = array<i32>} : memref<2x128xf32, #tpu.memory_space<vmem>>, vector<2x128xf32>,
      %42 = arith.truncf %23 : vector<16x128xf32> to vector<16x128xbf16>
      %43 = arith.index_cast %1 : i32 to index
      %c0_19 = arith.constant 0 : index
      %44 = vector.load %arg10[%43, %c0_19] : memref<32x128xbf16, #tpu.memory_space<vmem>>, vector<16x128xbf16>
      tpu.vector_store %arg10[%43, %c0_19], %42 {strides = array<i32>} : memref<32x128xbf16, #tpu.memory_space<vmem>>, vector<16x128xbf16>,
    } else {
    }
    %c1_i32 = arith.constant 1 : i32
    %10 = arith.cmpi eq, %arg0, %c1_i32 : i32
    %c0_i32_4 = arith.constant 0 : i32
    %11 = arith.cmpi eq, %arg1, %c0_i32_4 : i32
    %12 = arith.andi %10, %11 : i1
    %13 = arith.extui %12 : i1 to i32
    %c0_i32_5 = arith.constant 0 : i32
    %14 = arith.cmpi ne, %13, %c0_i32_5 : i32
    scf.if %14 {
      %c0 = arith.constant 0 : index
      %c0_8 = arith.constant 0 : index
      %18 = vector.load %arg11[%c0, %c0_8] : memref<2x128xf32, #tpu.memory_space<vmem>>, vector<1x128xf32>
      %cst = arith.constant 5.000000e-02 : f32
      %19 = vector.broadcast %cst : f32 to vector<1x128xf32>
      %20 = arith.mulf %18, %19 : vector<1x128xf32>
      %c1 = arith.constant 1 : index
      %c0_9 = arith.constant 0 : index
      %21 = vector.load %arg11[%c1, %c0_9] : memref<2x128xf32, #tpu.memory_space<vmem>>, vector<1x128xf32>
      %cst_10 = arith.constant 5.000000e-02 : f32
      %22 = vector.broadcast %cst_10 : f32 to vector<1x128xf32>
      %23 = arith.mulf %21, %22 : vector<1x128xf32>
      %24 = arith.mulf %20, %20 : vector<1x128xf32>
      %25 = arith.subf %23, %24 : vector<1x128xf32>
      %cst_11 = arith.constant 0.000000e+00 : f32
      %26 = vector.broadcast %cst_11 : f32 to vector<1x128xf32>
      %27 = arith.maximumf %25, %26 : vector<1x128xf32>
      %cst_12 = arith.constant 9.99999974E-6 : f32
      %28 = vector.broadcast %cst_12 : f32 to vector<1x128xf32>
      %29 = arith.addf %27, %28 : vector<1x128xf32>
      %30 = math.rsqrt %29 : vector<1x128xf32>
      %31 = tpu.concatenate %20, %30 in 0 : vector<1x128xf32>, vector<1x128xf32> -> vector<2x128xf32>
      %c0_13 = arith.constant 0 : index
      %c0_14 = arith.constant 0 : index
      %32 = vector.load %arg11[%c0_13, %c0_14] : memref<2x128xf32, #tpu.memory_space<vmem>>, vector<2x128xf32>
      tpu.vector_store %arg11[%c0_13, %c0_14], %31 {strides = array<i32>} : memref<2x128xf32, #tpu.memory_space<vmem>>, vector<2x128xf32>,
    } else {
    }
    %c1_i32_6 = arith.constant 1 : i32
    %15 = arith.cmpi eq, %arg0, %c1_i32_6 : i32
    %16 = arith.extui %15 : i1 to i32
    %c0_i32_7 = arith.constant 0 : i32
    %17 = arith.cmpi ne, %16, %c0_i32_7 : i32
    scf.if %17 {
      %c0 = arith.constant 0 : index
      %c0_8 = arith.constant 0 : index
      %18 = vector.load %arg11[%c0, %c0_8] : memref<2x128xf32, #tpu.memory_space<vmem>>, vector<1x128xf32>
      %c1 = arith.constant 1 : index
      %c0_9 = arith.constant 0 : index
      %19 = vector.load %arg11[%c1, %c0_9] : memref<2x128xf32, #tpu.memory_space<vmem>>, vector<1x128xf32>
      %20 = arith.index_cast %1 : i32 to index
      %c0_10 = arith.constant 0 : index
      %21 = vector.load %arg10[%20, %c0_10] : memref<32x128xbf16, #tpu.memory_space<vmem>>, vector<16x128xbf16>
      %22 = arith.extf %21 : vector<16x128xbf16> to vector<16x128xf32>
      %23 = vector.broadcast %18 : vector<1x128xf32> to vector<16x128xf32>
      %24 = arith.subf %22, %23 : vector<16x128xf32>
      %25 = vector.broadcast %19 : vector<1x128xf32> to vector<16x128xf32>
      %26 = arith.mulf %24, %25 : vector<16x128xf32>
      %c0_11 = arith.constant 0 : index
      %c0_12 = arith.constant 0 : index
      %27 = vector.load %arg5[%c0_11, %c0_12] : memref<1x128xf32, #tpu.memory_space<vmem>>, vector<1x128xf32>
      %28 = vector.broadcast %27 : vector<1x128xf32> to vector<16x128xf32>
      %29 = arith.mulf %26, %28 : vector<16x128xf32>
      %c0_13 = arith.constant 0 : index
      %c0_14 = arith.constant 0 : index
      %30 = vector.load %arg6[%c0_13, %c0_14] : memref<1x128xf32, #tpu.memory_space<vmem>>, vector<1x128xf32>
      %31 = vector.broadcast %30 : vector<1x128xf32> to vector<16x128xf32>
      %32 = arith.addf %29, %31 : vector<16x128xf32>
      %cst = arith.constant 0.000000e+00 : f32
      %33 = vector.broadcast %cst : f32 to vector<16x128xf32>
      %34 = arith.maximumf %32, %33 : vector<16x128xf32>
      %35 = arith.truncf %34 : vector<16x128xf32> to vector<16x128xbf16>
      %c0_15 = arith.constant 0 : index
      %c0_16 = arith.constant 0 : index
      %36 = vector.load %arg7[%c0_15, %c0_16] : memref<128x128xbf16, #tpu.memory_space<vmem>>, vector<128x128xbf16>
      %cst_17 = arith.constant dense<0.000000e+00> : vector<16x128xf32>
      %37 = tpu.matmul %35, %36, %cst_17 {dimension_numbers = #tpu.dot_dimension_numbers<[1], [0], [0], [1], [0, 0, 1, 1], [], []>} : vector<16x128xbf16>, vector<128x128xbf16>, vector<16x128xf32> -> vector<16x128xf32>
      %c0_18 = arith.constant 0 : index
      %c0_19 = arith.constant 0 : index
      %38 = vector.load %arg8[%c0_18, %c0_19] : memref<1x128xf32, #tpu.memory_space<vmem>>, vector<1x128xf32>
      %39 = vector.broadcast %38 : vector<1x128xf32> to vector<16x128xf32>
      %40 = arith.addf %37, %39 : vector<16x128xf32>
      %c0_20 = arith.constant 0 : index
      %c0_21 = arith.constant 0 : index
      %41 = vector.load %arg9[%c0_20, %c0_21] : memref<16x128xf32, #tpu.memory_space<vmem>>, vector<16x128xf32>
      tpu.vector_store %arg9[%c0_20, %c0_21], %40 {strides = array<i32>} : memref<16x128xf32, #tpu.memory_space<vmem>>, vector<16x128xf32>,
    } else {
    }
    return
  }
  func.func @transform_0(%arg0: i32, %arg1: i32) -> (i32, i32) {
    %c1_i32 = arith.constant 1 : i32
    %0 = arith.subi %c1_i32, %arg0 : i32
    %1 = arith.muli %0, %arg1 : i32
    %c1_i32_0 = arith.constant 1 : i32
    %2 = arith.muli %arg0, %c1_i32_0 : i32
    %3 = arith.addi %1, %2 : i32
    %c0_i32 = arith.constant 0 : i32
    %c0_i32_1 = arith.constant 0 : i32
    return %3, %c0_i32 : i32, i32
  }
  func.func @transform_1(%arg0: i32, %arg1: i32) -> (i32, i32) {
    %c0_i32 = arith.constant 0 : i32
    %c0_i32_0 = arith.constant 0 : i32
    %c0_i32_1 = arith.constant 0 : i32
    return %c0_i32, %c0_i32_0 : i32, i32
  }
  func.func @transform_2(%arg0: i32, %arg1: i32) -> (i32, i32) {
    %c0_i32 = arith.constant 0 : i32
    %c0_i32_0 = arith.constant 0 : i32
    %c0_i32_1 = arith.constant 0 : i32
    return %c0_i32, %c0_i32_0 : i32, i32
  }
  func.func @transform_3(%arg0: i32, %arg1: i32) -> (i32, i32) {
    %c0_i32 = arith.constant 0 : i32
    %c0_i32_0 = arith.constant 0 : i32
    %c0_i32_1 = arith.constant 0 : i32
    return %c0_i32, %c0_i32_0 : i32, i32
  }
  func.func @transform_4(%arg0: i32, %arg1: i32) -> (i32, i32) {
    %c0_i32 = arith.constant 0 : i32
    %c0_i32_0 = arith.constant 0 : i32
    %c0_i32_1 = arith.constant 0 : i32
    return %c0_i32, %c0_i32_0 : i32, i32
  }
  func.func @transform_5(%arg0: i32, %arg1: i32) -> (i32, i32) {
    %c0_i32 = arith.constant 0 : i32
    %c0_i32_0 = arith.constant 0 : i32
    %c0_i32_1 = arith.constant 0 : i32
    return %c0_i32, %c0_i32_0 : i32, i32
  }
  func.func @transform_6(%arg0: i32, %arg1: i32) -> (i32, i32) {
    %c0_i32 = arith.constant 0 : i32
    %c0_i32_0 = arith.constant 0 : i32
    %c0_i32_1 = arith.constant 0 : i32
    return %c0_i32, %c0_i32_0 : i32, i32
  }
  func.func @transform_7(%arg0: i32, %arg1: i32) -> (i32, i32) {
    %0 = arith.muli %arg0, %arg1 : i32
    %c0_i32 = arith.constant 0 : i32
    %c0_i32_0 = arith.constant 0 : i32
    return %0, %c0_i32 : i32, i32
  }
}

</mosaic_0001>

<bundles_post_ra>
// kernel: mlp_forward.1
= control target key start
LH: loop header
LB: loop body
LE: loop exit
PB: predicated region body
PF: predicated region fallthrough
CT: control target
= control target key end

     0   :  { %12 = vsyncpa [#allocation5], 0  ;;  %s1011_s24 = smov 0   ;;  %s1013_s25 = smov 0   ;;  %s1148_s0 = inlined_call_operand.vmem [shape: bf16[32,128], index: 0, kind: input, shape index: {}]   ;;  %s1149_s1 = inlined_call_operand.vmem [shape: bf16[128,128], index: 1, kind: input, shape index: {}]   ;;  %s1150_s2 = inlined_call_operand.vmem [shape: f32[1,128], index: 2, kind: input, shape index: {}]   ;;  %s1151_s3 = inlined_call_operand.vmem [shape: f32[1,128], index: 3, kind: input, shape index: {}]   ;;  %s1152_s4 = inlined_call_operand.vmem [shape: f32[1,128], index: 4, kind: input, shape index: {}]   ;;  %s1153_s5 = inlined_call_operand.hbm [shape: bf16[128,128], index: 5, kind: input, shape index: {}]   ;;  %s1154_s6 = inlined_call_operand.vmem [shape: f32[1,128], index: 6, kind: input, shape index: {}]   ;;  %s1155_s7 = inlined_call_operand.vmem [shape: f32[32,128], index: 7, kind: output, shape index: {}]  }
   0x1   :  { %s1015_s26 = smov 0   ;;  %s1017_s27 = smov 0  }
   0x2   :  { %s1019_s28 = smov 0  }
   0x3 LB: > { %s715_s29 = sadd.s32 4294967295, %s964_s28   ;;  %s27_s30 = sadd.s32 1, %s956_s26  ;;  %s964_s28 = sphi %s1019_s28, %s18_s28   ;;  %s960_s27 = sphi %s1017_s27, %s1161_s27   ;;  %s956_s26 = sphi %s1015_s26, %s1160_s26   ;;  %s952_s25 = sphi %s1013_s25, %s1159_s25   ;;  %s948_s24 = sphi %s1011_s24, %s1158_s24  }
   0x4   : > { %p28_p0 = scmp.ge.s32.totalorder %s27_s30, 2  ;;  %s30_s8 = sadd.s32 1, %s960_s27 }
   0x5   : > { %p717_p1 = scmp.ge.s32.totalorder %s964_s28, 1  ;;  %p221_p2 = scmp.lt.s32.totalorder %s964_s28, 5 }
   0x6   : > { %s1163_s30 = smov (%p28_p0, %s27_s30), 0  ;;  %s1165_s8 = smov (!%p28_p0, %s30_s8), %s960_s27 }
   0x7   : > { %p1044_p3 = pnand %p717_p1, %p221_p2  ;;  %p32_p4 = scmp.ge.s32.totalorder %s1165_s8, 2 }
   0x8   : > { %p1048_p5 = scmp.eq.s32.totalorder %s715_s29, 0  ;;  %s244_s13 = sshll.u32 %s1153_s5, 4  ;;  %s245_s13 = int_to_ptr.hbm [resolvable:$true] %s244_s13 }
   0x9   : > { %p833_p6 = pneg %p1044_p3  ;;  %s1167_s8 = smov (%p32_p4, %s1165_s8), 0 }
   0xa   : > { %s966_s14 = smov [#allocation4]   ;;  %s967_s16 = smov 64  }
   0xb   : > { %s246_s15 = sshll.u32 %s966_s14, 4  ;;  %p834_p7 = pnand %p1048_p5, %p833_p6  ;;  %s247_s15 = int_to_ptr.vmem [resolvable:$true] %s246_s15 }
   0xc   : > { %s968_s17 = smov 4   ;;  %280 = sbr.rel (%p1044_p3) target bundleno = 448 (0x1c0), region = 48 }
   0xd   : > { %836 = dma.hbm_to_vmem [thread:$0]  (!%p834_p7), %s245_s13, 1024, %s247_s15, [#allocation5], %s967_s16, %s967_s16, %s968_s17  }
  0x11   : > { %943 = dma.done.wait (%p1048_p5), [#allocation5], 1024  }
  0x12   : > { %945 = vsyncadd (%p1048_p5), [#allocation5], 4294966272  ;;  %s317_s18 = ssub.s32 1, %s952_s25  ;;  %s329_s19 = smul.u32 %s948_s24, %s952_s25 }
  0x13   : > { %s318_s20 = smul.u32 %s948_s24, %s317_s18  ;;  %s1072_s21 = sshll.u32 %s948_s24, 4 }
  0x14   : > { %s724_s22 = sshll.u32 %s329_s19, 1  ;;  %p338_p8 = scmp.eq.s32.totalorder %s952_s25, 0 }
  0x15   : > { %s319_s23 = sadd.s32 %s952_s25, %s318_s20  ;;  %p331_p9 = scmp.lt.s32.totalorder %s724_s22, 3 }
  0x16   : > { %s722_s29 = sshll.u32 %s319_s23, 1  ;;  %p339_p10 = scmp.eq.s32.totalorder %s948_s24, 0 }
  0x17   : > { %p321_p11 = scmp.lt.s32.totalorder %s722_s29, 3  ;;  %s1169_s22 = smov (!%p331_p9, %s724_s22), 3 }
  0x18   : > { %s725_s9 = sshll.u32 %s1169_s22, 3  ;;  %p340_p12 = pnand %p339_p10, %p338_p8 }
  0x19   : > { %s1171_s29 = smov (!%p321_p11, %s722_s29), 3  ;;  %s1082_s13 = scalar_lea.vmem %s1155_s7, %s725_s9 }
  0x1a   : > { %s723_s10 = sshll.u32 %s1171_s29, 2  ;;  %343 = sbr.rel (%p340_p12) target bundleno = 33 (0x21), region = 56 }
  0x1b   : > { %s324_s16 = scalar_lea.vmem %s1148_s0, %s723_s10 }
  0x1f   : > { %v969_v0 = vmov 0.0  }
  0x20   : > { %344 = vst [vmem:[#allocation3] sm:$0x3] %v969_v0 }
  0x21 PF: > { %p727_p13 = scmp.ne.s32.totalorder %s952_s25, 0 }
  0x22   : > { %s475_s23 = sshra.s32 (!%p727_p13), %s1072_s21, 3 }
  0x23   : > { %347 = sbr.rel (%p727_p13) target bundleno = 230 (0xe6), region = 60 }
  0x28   : > { %v811_v1 = vld [vmem:[%s1149_s1 + $0x38] sm:$0xff]  ;;  %v810_v2 = vld [vmem:[%s1149_s1 + $0x30] sm:$0xff]  ;;  %v809_v3 = vld [vmem:[%s1149_s1 + $0x28] sm:$0xff]  ;;  %v438_v10 = vlaneseq  ;;  %v441_v12 = vstv %s1072_s21  ;;  %v970_v19 = vmov 0.0   ;;  %vm468_vm2 = vcmask 1040384  }
  0x29   : > { %424 = vmatpush.bf16.msra.mxu0 %v811_v1  ;;  %v808_v4 = vld [vmem:[%s1149_s1 + $0x20] sm:$0xff]  ;;  %v807_v5 = vld [vmem:[%s1149_s1 + $0x18] sm:$0xff]  ;;  %v806_v6 = vld [vmem:[%s1149_s1 + $0x10] sm:$0xff] }
  0x2a   : > { %v805_v7 = vld [vmem:[%s1149_s1 + $0x8] sm:$0xff]  ;;  %v804_v8 = vld [vmem:[%s1149_s1] sm:$0xff]  ;;  %v439_v11 = vshrl.u32 %v438_v10, 7  ;;  %v470_v43 = vld [vmem:[#allocation3] sm:$0x3] }
  0x2b   : > { %v803_v9 = vld [vmem:[%s324_s16] sm:$0xff]  ;;  %s766_s16 = sshll.u32 %s475_s23, 2 }
  0x2c   : > { %v440_v13 = vadd.s32 8, %v439_v11  ;;  %v442_v14 = vadd.s32 %v441_v12, %v439_v11  ;;  %v884_v16 = vld [vmem:[%s1150_s2] ss:$0 sm:$0xff]  ;;  %s478_s29 = scalar_lea.vmem [#allocation2], %s766_s16 }
  0x2d   : > { %425 = vmatpush.bf16.msra.mxu0 %v810_v2 }
  0x2e   : > { %v443_v17 = vadd.s32 %v441_v12, %v440_v13  ;;  %vm444_vm0 = vcmp.lt.s32.totalorder %v442_v14, 20 }
  0x2f   : > { %v764_v20 = vsel %vm444_vm0, 1.0, %v970_v19 }
  0x30   : > { %vm445_vm1 = vcmp.lt.s32.totalorder %v443_v17, 20 }
  0x31   : > { %426 = vmatpush.bf16.msra.mxu0 %v809_v3  ;;  %v765_v22 = vsel %vm445_vm1, 1.0, %v970_v19 }
  0x35   : > { %427 = vmatpush.bf16.msra.mxu0 %v808_v4 }
  0x39   : > { %428 = vmatpush.bf16.msra.mxu0 %v807_v5 }
  0x3d   : > { %429 = vmatpush.bf16.msra.mxu0 %v806_v6 }
  0x41   : > { %430 = vmatpush.bf16.msra.mxu0 %v805_v7 }
  0x45   : > { %431 = vmatpush.bf16.msra.mxu0 %v804_v8 }
  0x48   : > { %432 = vmatmul.bf16.vlgmr.msra.gmra.mxu0 %v803_v9 }
  0xc5   : > { %v433_v15 = vpop.f32.mrf.mxu0 }
  0xc6   : > { %v434_v18 = vadd.f32 %v884_v16, %v433_v15 }
  0xc8   : > { %v450_v23 = vmul.f32 %v764_v20, %v434_v18 }
  0xca   : > { %v459_v27 = vmul.f32 %v450_v23, %v434_v18 }
  0xcd   : > { %v435_v21 = vpop.f32.mrf.mxu0 }
  0xce   : > { %v436_v24 = vadd.f32 %v884_v16, %v435_v21 }
  0xd0   : > { %v451_v25 = vmul.f32 %v765_v22, %v436_v24  ;;  %v823_v26 = vpack.c.bf16 %v436_v24, %v434_v18 }
  0xd2   : > { %v452_v28 = vadd.f32 %v451_v25, %v450_v23  ;;  %v460_v29 = vmul.f32 %v451_v25, %v436_v24  ;;  %824 = vst [vmem:[%s478_s29] sm:$0xff] %v823_v26  }
  0xd4   : > { %v453_v30 = vrot.slane %v452_v28, 4  ;;  %v461_v31 = vadd.f32 %v460_v29, %v459_v27 }
  0xd6   : > { %v454_v32 = vadd.f32 %v453_v30, %v452_v28  ;;  %v462_v33 = vrot.slane %v461_v31, 4 }
  0xd8   : > { %v455_v34 = vrot.slane %v454_v32, 2  ;;  %v463_v35 = vadd.f32 %v462_v33, %v461_v31 }
  0xda   : > { %v456_v36 = vadd.f32 %v455_v34, %v454_v32  ;;  %v464_v37 = vrot.slane %v463_v35, 2 }
  0xdc   : > { %v457_v38 = vrot.slane %v456_v36, 1  ;;  %v465_v39 = vadd.f32 %v464_v37, %v463_v35 }
  0xde   : > { %v466_v40 = vrot.slane %v465_v39, 1  ;;  %v458_v41 = vadd.f32 %v457_v38, %v456_v36 }
  0xe0   : > { %v467_v42 = vadd.f32 %v466_v40, %v465_v39 }
  0xe2   : > { %v469_v44 = vsel %vm468_vm2, %v458_v41, %v467_v42 }
  0xe3   : > { %v471_v45 = vadd.f32 %v470_v43, %v469_v44 }
  0xe5   : > { %472 = vst [vmem:[#allocation3] sm:$0x3] %v471_v45 }
  0xe6 PF: > { %p481_p0 = scmp.eq.s32.totalorder %s952_s25, 1 }
  0xe8   : > { %p482_p1 = pnand %p481_p0, %p339_p10 }
  0xea   : > { %485 = sbr.rel (%p482_p1) target bundleno = 272 (0x110), region = 64 }
  0xef   : > { %v486_v46 = vld [vmem:[#allocation3] sm:$0x1]  ;;  %v488_v47 = vld [vmem:[#allocation3 + $0x1] sm:$0x1]  ;;  %vm507_vm6 = vcmask 1040384  }
  0xf0   : > { %v487_v48 = vmul.f32 0.05, %v486_v46  ;;  %v489_v49 = vmul.f32 0.05, %v488_v47 }
  0xf2   : > { %v490_v50 = vmul.f32 %v487_v48, %v487_v48 }
  0xf4   : > { %v491_v51 = vsub.f32 %v489_v49, %v490_v50 }
  0xf6   : > { %v492_v52 = vmax.f32 %v491_v51, 0.0 }
  0xf8   : > { %v493_v53 = vadd.f32 1e-05, %v492_v52 }
  0xfa   : > { %885 = vrsqrt.f32 %v493_v53  ;;  %vm500_vm3 = vweird.f32 %v493_v53 }
 0x100   : > { %v886_v54 = vpop.eup %885 }
 0x101   : > { %v495_v55 = vmul.f32 %v886_v54, %v493_v53  ;;  %vm501_vm4 = vweird.f32 %v886_v54 }
 0x102   : > { %vm502_vm5 = vmor %vm500_vm3, %vm501_vm4 }
 0x103   : > { %v496_v56 = vmul.f32 %v886_v54, %v495_v55 }
 0x105   : > { %v497_v57 = vmul.f32 0.5, %v496_v56 }
 0x107   : > { %v498_v58 = vsub.f32 1.5, %v497_v57 }
 0x109   : > { %v499_v59 = vmul.f32 %v886_v54, %v498_v58 }
 0x10b   : > { %v503_v60 = vsel %vm502_vm5, %v886_v54, %v499_v59 }
 0x10c   : > { %v505_v61 = vrot.slane %v503_v60, 7 }
 0x10e   : > { %v508_v62 = vsel %vm507_vm6, %v487_v48, %v505_v61 }
 0x10f   : > { %509 = vst [vmem:[#allocation3] sm:$0x3] %v508_v62 }
 0x110 PF: > { %p767_p2 = scmp.ne.s32.totalorder %s952_s25, 1 }
 0x111   : > { %s515_s24 = sshra.s32 (!%p767_p2), %s1072_s21, 3 }
 0x112   : > { %512 = sbr.rel (%p767_p2) target bundleno = 448 (0x1c0), region = 68  ;;  %s768_s9 = sshll.u32 (!%p767_p2), %s515_s24, 2 }
 0x113   : > { %s518_s10 = scalar_lea.vmem (!%p767_p2), [#allocation2], %s768_s9 }
 0x117   : > { %v819_v63 = vld [vmem:[#allocation4 + $0x38] sm:$0xff]  ;;  %v818_v0 = vld [vmem:[#allocation4 + $0x30] sm:$0xff]  ;;  %v817_v5 = vld [vmem:[#allocation4 + $0x28] sm:$0xff] }
 0x118   : > { %612 = vmatpush.bf16.msra.mxu0 %v819_v63  ;;  %v826_v1 = vld [vmem:[%s518_s10] sm:$0xff]   ;;  %v887_v4 = vld [vmem:[#allocation3] ss:$0 sm:$0xff]  ;;  %v888_v8 = vld [vmem:[#allocation3 + $0x1] ss:$0 sm:$0xff] }
 0x119   : > { %v827_v2 = vunpack.c.l.bf16 %v826_v1  ;;  %v828_v3 = vunpack.c.h.bf16 %v826_v1  ;;  %v816_v9 = vld [vmem:[#allocation4 + $0x20] sm:$0xff]  ;;  %v889_v12 = vld [vmem:[%s1151_s3] ss:$0 sm:$0xff]  ;;  %v815_v13 = vld [vmem:[#allocation4 + $0x18] sm:$0xff] }
 0x11a   : > { %v890_v16 = vld [vmem:[%s1152_s4] ss:$0 sm:$0xff]  ;;  %v814_v17 = vld [vmem:[#allocation4 + $0x10] sm:$0xff]  ;;  %v812_v23 = vld [vmem:[#allocation4] sm:$0xff] }
 0x11b   : > { %v524_v6 = vsub.f32 %v827_v2, %v887_v4  ;;  %v525_v7 = vsub.f32 %v828_v3, %v887_v4  ;;  %v813_v20 = vld [vmem:[#allocation4 + $0x8] sm:$0xff] }
 0x11c   : > { %613 = vmatpush.bf16.msra.mxu0 %v818_v0  ;;  %v891_v25 = vld [vmem:[%s1154_s6] ss:$0 sm:$0xff] }
 0x11d   : > { %v527_v10 = vmul.f32 %v888_v8, %v524_v6  ;;  %v528_v11 = vmul.f32 %v888_v8, %v525_v7 }
 0x11f   : > { %v533_v14 = vmul.f32 %v889_v12, %v527_v10  ;;  %v534_v15 = vmul.f32 %v889_v12, %v528_v11 }
 0x120   : > { %614 = vmatpush.bf16.msra.mxu0 %v817_v5 }
 0x121   : > { %v539_v18 = vadd.f32 %v890_v16, %v533_v14  ;;  %v540_v19 = vadd.f32 %v890_v16, %v534_v15 }
 0x123   : > { %v541_v21 = vmax.f32 %v539_v18, 0.0  ;;  %v542_v22 = vmax.f32 %v540_v19, 0.0 }
 0x124   : > { %615 = vmatpush.bf16.msra.mxu0 %v816_v9 }
 0x125   : > { %v543_v24 = vpack.c.bf16 %v542_v22, %v541_v21 }
 0x128   : > { %616 = vmatpush.bf16.msra.mxu0 %v815_v13 }
 0x12c   : > { %617 = vmatpush.bf16.msra.mxu0 %v814_v17 }
 0x130   : > { %618 = vmatpush.bf16.msra.mxu0 %v813_v20 }
 0x134   : > { %619 = vmatpush.bf16.msra.mxu0 %v812_v23 }
 0x137   : > { %620 = vmatmul.bf16.vlgmr.msra.gmra.mxu0 %v543_v24 }
 0x1b4   : > { %v621_v26 = vpop.f32.mrf.mxu0 }
 0x1b5   : > { %v622_v27 = vadd.f32 %v891_v25, %v621_v26 }
 0x1b7   : > { %626 = vst [vmem:[%s1082_s13] sm:$0xff] %v622_v27 }
 0x1bc   : > { %v623_v28 = vpop.f32.mrf.mxu0 }
 0x1bd   : > { %v624_v29 = vadd.f32 %v891_v25, %v623_v28 }
 0x1bf   : > { %627 = vst [vmem:[%s1082_s13 + $0x8] sm:$0xff] %v624_v29 }
 0x1c0 PF: > { %s18_s28 = sadd.s32 1, %s964_s28   ;;  %s1158_s24 = smov %s956_s26 }
 0x1c1   : > { %p15_p3 = scmp.ge.s32.totalorder %s18_s28, 6   ;;  %s1159_s25 = smov %s960_s27 }
 0x1c2   : > { %s1160_s26 = smov %s1163_s30  ;;  %s1161_s27 = smov %s1167_s8 }
 0x1c3   :  { %17 = sbr.rel (!%p15_p3) target bundleno = 3 (0x3), region = 101 }
 0x1c8   :  { %653 = vsyncpa [#allocation5], 1 }
 0x1c9   :  { %655 = vsyncpa [#allocation5 + $0x1], 1 }

</bundles_post_ra>
